<compile_context>
chip_gen: v7x
topology: tpu7x:2x2x1
jax: 0.10.0
libtpu: 0.0.40
codegen_flags: <defaults>
</compile_context>

<pallas_src>
import functools

import jax
import jax.numpy as jnp
from jax import lax
from jax.experimental import pallas as pl
from jax.experimental.pallas import tpu as pltpu


# ----------------------------------------------------------------------------
# Synthetic KataGo-like model configuration (structure EvalModel expects).
# ----------------------------------------------------------------------------
C_SPATIAL = 8      # spatial input channels
C_GLOBAL = 8       # global input features
C_TRUNK = 32       # trunk channels
C_POLICY = 6       # conv2p output channels (>5 -> optimistic head)
C_VALUE = 3
C_MISC = 10        # miscvalue channels (EvalModel keeps first 4)
C_MOREMISC = 8     # moremiscvalue channels (EvalModel keeps first 2)

POLICY_OUTPUT_CHANNELS = (0, 5)    # has_optimistic_head

# per-cell output slab rows (sublanes): [policy ch0, policy ch5, ownership, pad]
CELL_ROWS = 8
_ROW_POL0, _ROW_POL5, _ROW_OWN = 0, 1, 2
_N_CELL_ROWS_USED = 3


def init_params(key):
    ks = jax.random.split(key, 10)

    def w(k, shape, scale):
        return jax.random.normal(k, shape, dtype=jnp.float32) * scale

    p = {}
    # trunk: 1x1 conv over [spatial ++ global] channels, split so the global
    # part can be folded into a per-batch bias column.
    w_trunk = w(ks[0], (C_SPATIAL + C_GLOBAL, C_TRUNK), 0.20)
    p["w_sp"] = w_trunk[:C_SPATIAL]
    p["w_gl"] = w_trunk[C_SPATIAL:]
    p["b_trunk"] = w(ks[1], (C_TRUNK,), 0.05)
    # policy head: spatial 1x1 conv (conv2p) + pass-move linear from pooled trunk
    p["w_pol"] = w(ks[2], (C_TRUNK, C_POLICY), 0.15)
    p["b_pol"] = w(ks[3], (C_POLICY,), 0.05)
    p["w_pass"] = w(ks[4], (C_TRUNK, C_POLICY), 0.15)
    p["b_pass"] = w(ks[5], (C_POLICY,), 0.05)
    # value head: one linear producing value(3) ++ miscvalue(10) ++ moremiscvalue(8)
    p["w_val"] = w(ks[6], (C_TRUNK, C_VALUE + C_MISC + C_MOREMISC), 0.15)
    p["b_val"] = w(ks[7], (C_VALUE + C_MISC + C_MOREMISC,), 0.05)
    # ownership head: 1x1 conv to 1 channel, tanh
    p["w_own"] = w(ks[8], (C_TRUNK, 1), 0.15)
    p["b_own"] = w(ks[9], (1,), 0.05)
    return p


# ----------------------------------------------------------------------------
# Fused Pallas kernel: trunk -> per-cell heads (transposed) + masked pool sum.
# ----------------------------------------------------------------------------
def _fused_eval_kernel(x_ref, tb_ref, wsp_ref, wcell_ref, bcell_ref,
                       cell_ref, psum_ref, *, tile_hw, hw_real, hw_pad):
    # x_ref:     (1, C_SPATIAL, tile_hw) f32   NCHW-flat tile, HW in lanes
    # tb_ref:    (1, C_TRUNK, 1)         f32   per-batch folded trunk bias
    # wsp_ref:   (C_TRUNK, C_SPATIAL)    bf16  trunk 1x1-conv weight (transposed)
    # wcell_ref: (CELL_ROWS, C_TRUNK)    bf16  packed per-cell head weights
    # bcell_ref: (CELL_ROWS, 1)          f32
    # cell_ref:  (1, CELL_ROWS, tile_hw) f32   per-cell heads (channel-major)
    # psum_ref:  (1, 1, C_TRUNK, 1)      f32   per-tile pooled partial sum
    s = pl.program_id(1)

    # --- trunk tile: 1x1 conv (+ folded global bias) + relu, f32 MXU accum ---
    x_bf = x_ref[0].astype(jnp.bfloat16)
    trunk = jnp.dot(wsp_ref[...], x_bf, preferred_element_type=jnp.float32)
    trunk = jnp.maximum(trunk + tb_ref[0], 0.0)        # (C_TRUNK, tile_hw) f32

    # --- per-cell heads: policy[0,5] + ownership (pre-tanh), 8 x HW slab ---
    heads = jnp.dot(wcell_ref[...], trunk.astype(jnp.bfloat16),
                    preferred_element_type=jnp.float32)
    cell_ref[0] = (heads + bcell_ref[...]).astype(cell_ref.dtype)

    # --- pooled partial sum: f32 lane reduction, padded lanes masked out ---
    if hw_pad > hw_real:  # static branch: only emit the mask when padding exists
        lane = lax.broadcasted_iota(jnp.int32, trunk.shape, 1)
        trunk = jnp.where(s * tile_hw + lane < hw_real, trunk, 0.0)
    psum_ref[0, 0] = jnp.sum(trunk, axis=1, keepdims=True)


# ----------------------------------------------------------------------------
# Forward pass (EvalModel semantics on top of the synthetic model).
# ----------------------------------------------------------------------------
def eval_model_forward(params, input_spatial, input_global, *, max_tile_hw=2048):
    # input_spatial: (N, C_SPATIAL, H, W)  NCHW ;  input_global: (N, C_GLOBAL)
    N, Cs, H, W = input_spatial.shape
    HW = H * W
    hw128 = -(-HW // 128) * 128                  # pad HW up to lane multiple
    tile_hw = min(hw128, max_tile_hw)
    hw_pad = -(-HW // tile_hw) * tile_hw
    n_tiles = hw_pad // tile_hw

    # NCHW is already (N, Cs, HW) after a free reshape; kernel casts to bf16.
    x = input_spatial.reshape(N, Cs, HW).astype(jnp.float32)
    if hw_pad != HW:
        x = jnp.pad(x, ((0, 0), (0, 0), (0, hw_pad - HW)))

    # Fold global features into a per-batch trunk-bias column (tiny f32 matmul).
    trunk_bias = (input_global.astype(jnp.float32) @ params["w_gl"]
                  + params["b_trunk"])[:, :, None]               # (N, C_TRUNK, 1)

    # Trace-time weight packing (transposed, kept channels only).
    w_spT = params["w_sp"].T.astype(jnp.bfloat16)                # (C_TRUNK, Cs)
    chans = jnp.array(POLICY_OUTPUT_CHANNELS, dtype=jnp.int32)
    w_cell = jnp.concatenate([params["w_pol"][:, chans], params["w_own"]], axis=1)
    b_cell = jnp.concatenate([params["b_pol"][chans], params["b_own"]], axis=0)
    w_cellT = jnp.pad(w_cell.T, ((0, CELL_ROWS - _N_CELL_ROWS_USED), (0, 0)))
    w_cellT = w_cellT.astype(jnp.bfloat16)                       # (8, C_TRUNK)
    b_cell_col = jnp.pad(b_cell, (0, CELL_ROWS - _N_CELL_ROWS_USED))[:, None]
    b_cell_col = b_cell_col.astype(jnp.float32)                  # (8, 1)

    kernel = functools.partial(_fused_eval_kernel, tile_hw=tile_hw,
                               hw_real=HW, hw_pad=hw_pad)

    cell, psum = pl.pallas_call(
        kernel,
        out_shape=(
            jax.ShapeDtypeStruct((N, CELL_ROWS, hw_pad), jnp.float32),   # per-cell heads
            jax.ShapeDtypeStruct((N, n_tiles, C_TRUNK, 1), jnp.float32),  # pool partials
        ),
        grid_spec=pltpu.PrefetchScalarGridSpec(
            num_scalar_prefetch=0,
            grid=(N, n_tiles),
            in_specs=[
                pl.BlockSpec((1, Cs, tile_hw), lambda n, s: (n, 0, s)),      # x
                pl.BlockSpec((1, C_TRUNK, 1), lambda n, s: (n, 0, 0)),       # trunk bias
                pl.BlockSpec((C_TRUNK, Cs), lambda n, s: (0, 0)),            # w_spT
                pl.BlockSpec((CELL_ROWS, C_TRUNK), lambda n, s: (0, 0)),     # w_cellT
                pl.BlockSpec((CELL_ROWS, 1), lambda n, s: (0, 0)),           # b_cell
            ],
            out_specs=[
                pl.BlockSpec((1, CELL_ROWS, tile_hw), lambda n, s: (n, 0, s)),
                pl.BlockSpec((1, 1, C_TRUNK, 1), lambda n, s: (n, s, 0, 0)),
            ],
        ),
        compiler_params=pltpu.CompilerParams(
            dimension_semantics=("parallel", "parallel"),
        ),
    )(x, trunk_bias, w_spT, w_cellT, b_cell_col)

    # --- per-cell heads: already channel-major, contiguous row slices ---
    pol_sp = cell[:, _ROW_POL0:_ROW_POL5 + 1, :HW]               # (N, 2, HW)
    ownership = jnp.tanh(cell[:, _ROW_OWN, :HW]).reshape(N, 1, H, W)

    # --- pooled heads: tiny f32 matmuls in XLA on the pooled mean ---
    pooled = jnp.sum(psum[..., 0], axis=1) / HW                  # (N, C_TRUNK)
    pass_logits = pooled @ params["w_pass"][:, chans] + params["b_pass"][chans]
    val_all = pooled @ params["w_val"] + params["b_val"]
    value = val_all[:, :C_VALUE]
    miscvalue = val_all[:, C_VALUE:C_VALUE + 4]
    moremiscvalue = val_all[:, C_VALUE + C_MISC:C_VALUE + C_MISC + 2]

    policy_out = jnp.concatenate([pol_sp, pass_logits[:, :, None]], axis=-1)
    return (policy_out, value, miscvalue, moremiscvalue, ownership)


# ----------------------------------------------------------------------------
# Pure-JAX f32 reference (same synthetic model, unfused) for correctness checks.
# ----------------------------------------------------------------------------
def eval_model_reference(params, input_spatial, input_global):
    N, Cs, H, W = input_spatial.shape
    HW = H * W
    x_sp = jnp.transpose(input_spatial, (0, 2, 3, 1)).reshape(N * HW, Cs)
    x_gl = jnp.broadcast_to(input_global[:, None, :], (N, HW, C_GLOBAL)).reshape(N * HW, C_GLOBAL)
    x = jnp.concatenate([x_sp, x_gl], axis=-1)
    w_trunk = jnp.concatenate([params["w_sp"], params["w_gl"]], axis=0)
    trunk = jnp.maximum(x @ w_trunk + params["b_trunk"], 0.0)

    pol_sp = trunk @ params["w_pol"] + params["b_pol"]
    pooled = jnp.mean(trunk.reshape(N, HW, C_TRUNK), axis=1)
    pass_logits = pooled @ params["w_pass"] + params["b_pass"]
    val_all = pooled @ params["w_val"] + params["b_val"]
    value = val_all[:, :C_VALUE]
    miscvalue = val_all[:, C_VALUE:C_VALUE + C_MISC]
    moremiscvalue = val_all[:, C_VALUE + C_MISC:]
    own = jnp.tanh(trunk @ params["w_own"] + params["b_own"])

    pol_sp = jnp.transpose(pol_sp.reshape(N, HW, C_POLICY), (0, 2, 1))
    policy = jnp.concatenate([pol_sp, pass_logits[:, :, None]], axis=-1)
    ownership = jnp.transpose(own.reshape(N, H, W, 1), (0, 3, 1, 2))
    policy_out = policy[:, jnp.array(POLICY_OUTPUT_CHANNELS)]
    return (policy_out, value, miscvalue[:, :4], moremiscvalue[:, :2], ownership)


# ----------------------------------------------------------------------------
if __name__ == "__main__":
    key = jax.random.PRNGKey(0)
    k_params, k_sp, k_gl, k_sp2, k_gl2 = jax.random.split(key, 5)
    params = init_params(k_params)

    fwd = jax.jit(eval_model_forward)

    # (16x16: HW=256 -> exact lane multiple; 9x9: HW=81 -> padded + masked pool)
    cases = [((2, 16, 16), k_sp, k_gl), ((2, 9, 9), k_sp2, k_gl2)]
    for (N, H, W), ks, kg in cases:
        input_spatial = jax.random.normal(ks, (N, C_SPATIAL, H, W), dtype=jnp.float32)
        input_global = jax.random.normal(kg, (N, C_GLOBAL), dtype=jnp.float32)

        outputs = jax.block_until_ready(fwd(params, input_spatial, input_global))
        policy_out, value, miscvalue, moremiscvalue, ownership = outputs
        assert policy_out.shape == (N, 2, H * W + 1)
        assert value.shape == (N, C_VALUE)
        assert miscvalue.shape == (N, 4)
        assert moremiscvalue.shape == (N, 2)
        assert ownership.shape == (N, 1, H, W)

        # correctness vs. unfused f32 reference (bf16 MXU inputs -> loose tolerance)
        ref = eval_model_reference(params, input_spatial, input_global)
        for got, want in zip(outputs, ref):
            assert got.shape == want.shape, (got.shape, want.shape)
            assert jnp.allclose(got, want, rtol=5e-2, atol=5e-2), \
                float(jnp.max(jnp.abs(got - want)))

    print("KERNEL_OK")
</pallas_src>

<mosaic_0001>
module attributes {stable_mosaic.version = 11 : i64} {
  func.func @_fused_eval_kernel(%arg0: i32, %arg1: i32, %arg2: memref<1x8x256xf32, #tpu.memory_space<vmem>>, %arg3: memref<1x32x1xf32, #tpu.memory_space<vmem>>, %arg4: memref<32x8xbf16, #tpu.memory_space<vmem>>, %arg5: memref<8x32xbf16, #tpu.memory_space<vmem>>, %arg6: memref<8x1xf32, #tpu.memory_space<vmem>>, %arg7: memref<1x8x256xf32, #tpu.memory_space<vmem>>, %arg8: memref<1x1x32x1xf32, #tpu.memory_space<vmem>>) attributes {dimension_semantics = [#tpu.dimension_semantics<parallel>, #tpu.dimension_semantics<parallel>], iteration_bounds = array<i64: 2, 1>, scalar_prefetch = 0 : i64, scratch_operands = 0 : i64, tpu.core_type = #tpu.core_type<tc>, window_params = [{transform_indices = @transform_0, window_bounds = array<i64: 1, 8, 256>}, {transform_indices = @transform_1, window_bounds = array<i64: 1, 32, 1>}, {pipeline_mode = #tpu.pipeline_mode<synchronous>, transform_indices = @transform_2, window_bounds = array<i64: 32, 8>}, {pipeline_mode = #tpu.pipeline_mode<synchronous>, transform_indices = @transform_3, window_bounds = array<i64: 8, 32>}, {pipeline_mode = #tpu.pipeline_mode<synchronous>, transform_indices = @transform_4, window_bounds = array<i64: 8, 1>}, {transform_indices = @transform_5, window_bounds = array<i64: 1, 8, 256>}, {transform_indices = @transform_6, window_bounds = array<i64: 1, 1, 32, 1>}]} {
    %c0 = arith.constant 0 : index
    %c0_0 = arith.constant 0 : index
    %c0_1 = arith.constant 0 : index
    %0 = vector.load %arg2[%c0, %c0_0, %c0_1] : memref<1x8x256xf32, #tpu.memory_space<vmem>>, vector<1x8x256xf32>
    %1 = vector.shape_cast %0 : vector<1x8x256xf32> to vector<8x256xf32>
    %2 = arith.truncf %1 : vector<8x256xf32> to vector<8x256xbf16>
    %c0_2 = arith.constant 0 : index
    %c0_3 = arith.constant 0 : index
    %3 = vector.load %arg4[%c0_2, %c0_3] : memref<32x8xbf16, #tpu.memory_space<vmem>>, vector<32x8xbf16>
    %cst = arith.constant dense<0.000000e+00> : vector<32x256xf32>
    %4 = tpu.matmul %3, %2, %cst {dimension_numbers = #tpu.dot_dimension_numbers<[1], [0], [0], [1], [0, 0, 1, 1], [], []>} : vector<32x8xbf16>, vector<8x256xbf16>, vector<32x256xf32> -> vector<32x256xf32>
    %c0_4 = arith.constant 0 : index
    %c0_5 = arith.constant 0 : index
    %c0_6 = arith.constant 0 : index
    %5 = vector.load %arg3[%c0_4, %c0_5, %c0_6] : memref<1x32x1xf32, #tpu.memory_space<vmem>>, vector<1x32x1xf32>
    %6 = vector.shape_cast %5 : vector<1x32x1xf32> to vector<32x1xf32>
    %7 = vector.broadcast %6 : vector<32x1xf32> to vector<32x256xf32>
    %8 = arith.addf %4, %7 : vector<32x256xf32>
    %cst_7 = arith.constant 0.000000e+00 : f32
    %9 = vector.broadcast %cst_7 : f32 to vector<32x256xf32>
    %10 = arith.maximumf %8, %9 : vector<32x256xf32>
    %c0_8 = arith.constant 0 : index
    %c0_9 = arith.constant 0 : index
    %11 = vector.load %arg5[%c0_8, %c0_9] : memref<8x32xbf16, #tpu.memory_space<vmem>>, vector<8x32xbf16>
    %12 = arith.truncf %10 : vector<32x256xf32> to vector<32x256xbf16>
    %cst_10 = arith.constant dense<0.000000e+00> : vector<8x256xf32>
    %13 = tpu.matmul %11, %12, %cst_10 {dimension_numbers = #tpu.dot_dimension_numbers<[1], [0], [0], [1], [0, 0, 1, 1], [], []>} : vector<8x32xbf16>, vector<32x256xbf16>, vector<8x256xf32> -> vector<8x256xf32>
    %c0_11 = arith.constant 0 : index
    %c0_12 = arith.constant 0 : index
    %14 = vector.load %arg6[%c0_11, %c0_12] : memref<8x1xf32, #tpu.memory_space<vmem>>, vector<8x1xf32>
    %15 = vector.broadcast %14 : vector<8x1xf32> to vector<8x256xf32>
    %16 = arith.addf %13, %15 : vector<8x256xf32>
    %c0_13 = arith.constant 0 : index
    %c0_14 = arith.constant 0 : index
    %c0_15 = arith.constant 0 : index
    %17 = vector.load %arg7[%c0_13, %c0_14, %c0_15] : memref<1x8x256xf32, #tpu.memory_space<vmem>>, vector<1x8x256xf32>
    %18 = vector.shape_cast %17 : vector<1x8x256xf32> to vector<8x256xf32>
    %19 = vector.shape_cast %16 : vector<8x256xf32> to vector<1x8x256xf32>
    tpu.vector_store %arg7[%c0_13, %c0_14, %c0_15], %19 {strides = array<i32>} : memref<1x8x256xf32, #tpu.memory_space<vmem>>, vector<1x8x256xf32>,
    %cst_16 = arith.constant dense<0.000000e+00> : vector<32xf32>
    %20 = vector.multi_reduction <add>, %10, %cst_16 [1] : vector<32x256xf32> to vector<32xf32>
    %21 = vector.shape_cast %20 : vector<32xf32> to vector<32x1xf32>
    %c0_17 = arith.constant 0 : index
    %c0_18 = arith.constant 0 : index
    %c0_19 = arith.constant 0 : index
    %c0_20 = arith.constant 0 : index
    %22 = vector.load %arg8[%c0_17, %c0_18, %c0_19, %c0_20] : memref<1x1x32x1xf32, #tpu.memory_space<vmem>>, vector<1x1x32x1xf32>
    %23 = vector.shape_cast %22 : vector<1x1x32x1xf32> to vector<32x1xf32>
    %24 = vector.shape_cast %21 : vector<32x1xf32> to vector<1x1x32x1xf32>
    tpu.vector_store %arg8[%c0_17, %c0_18, %c0_19, %c0_20], %24 {strides = array<i32>} : memref<1x1x32x1xf32, #tpu.memory_space<vmem>>, vector<1x1x32x1xf32>,
    return
  }
  func.func @transform_0(%arg0: i32, %arg1: i32) -> (i32, i32, i32) {
    %c0_i32 = arith.constant 0 : i32
    %c0_i32_0 = arith.constant 0 : i32
    return %arg0, %c0_i32, %arg1 : i32, i32, i32
  }
  func.func @transform_1(%arg0: i32, %arg1: i32) -> (i32, i32, i32) {
    %c0_i32 = arith.constant 0 : i32
    %c0_i32_0 = arith.constant 0 : i32
    %c0_i32_1 = arith.constant 0 : i32
    return %arg0, %c0_i32, %c0_i32_0 : i32, i32, i32
  }
  func.func @transform_2(%arg0: i32, %arg1: i32) -> (i32, i32) {
    %c0_i32 = arith.constant 0 : i32
    %c0_i32_0 = arith.constant 0 : i32
    %c0_i32_1 = arith.constant 0 : i32
    return %c0_i32, %c0_i32_0 : i32, i32
  }
  func.func @transform_3(%arg0: i32, %arg1: i32) -> (i32, i32) {
    %c0_i32 = arith.constant 0 : i32
    %c0_i32_0 = arith.constant 0 : i32
    %c0_i32_1 = arith.constant 0 : i32
    return %c0_i32, %c0_i32_0 : i32, i32
  }
  func.func @transform_4(%arg0: i32, %arg1: i32) -> (i32, i32) {
    %c0_i32 = arith.constant 0 : i32
    %c0_i32_0 = arith.constant 0 : i32
    %c0_i32_1 = arith.constant 0 : i32
    return %c0_i32, %c0_i32_0 : i32, i32
  }
  func.func @transform_5(%arg0: i32, %arg1: i32) -> (i32, i32, i32) {
    %c0_i32 = arith.constant 0 : i32
    %c0_i32_0 = arith.constant 0 : i32
    return %arg0, %c0_i32, %arg1 : i32, i32, i32
  }
  func.func @transform_6(%arg0: i32, %arg1: i32) -> (i32, i32, i32, i32) {
    %c0_i32 = arith.constant 0 : i32
    %c0_i32_0 = arith.constant 0 : i32
    %c0_i32_1 = arith.constant 0 : i32
    return %arg0, %arg1, %c0_i32, %c0_i32_0 : i32, i32, i32, i32
  }
}

</mosaic_0001>

<bundles_post_ra>
// kernel: eval_model_forward.1
= control target key start
LH: loop header
LB: loop body
LE: loop exit
PB: predicated region body
PF: predicated region fallthrough
CT: control target
= control target key end

     0   :  { %s793_s21 = smov 0   ;;  %s795_s22 = smov 0   ;;  %s856_s0 = inlined_call_operand.vmem [shape: f32[2,8,256], index: 0, kind: input, shape index: {}]   ;;  %s857_s1 = inlined_call_operand.vmem [shape: f32[2,32,1], index: 1, kind: input, shape index: {}]   ;;  %s858_s2 = inlined_call_operand.vmem [shape: bf16[32,8], index: 2, kind: input, shape index: {}]   ;;  %s859_s3 = inlined_call_operand.vmem [shape: bf16[8,32], index: 3, kind: input, shape index: {}]   ;;  %s860_s4 = inlined_call_operand.vmem [shape: f32[8,1], index: 4, kind: input, shape index: {}]   ;;  %s861_s5 = inlined_call_operand.vmem [shape: f32[2,8,256], index: 5, kind: output, shape index: {0}]   ;;  %s862_s6 = inlined_call_operand.vmem [shape: f32[2,1,32,1], index: 6, kind: output, shape index: {1}]  }
   0x1   :  { %s797_s23 = smov 0  }
   0x2 LB: > { %s29_s24 = sadd.s32 1, %s751_s22  ;;  %p683_p0 = scmp.ge.s32.totalorder %s755_s23, 1  ;;  %s755_s23 = sphi %s797_s23, %s17_s23   ;;  %s751_s22 = sphi %s795_s22, %s864_s22   ;;  %s747_s21 = sphi %s793_s21, %s863_s21  }
   0x3   : > { %p31_p1 = scmp.ge.s32.totalorder %s29_s24, 2  ;;  %p248_p2 = scmp.lt.s32.totalorder %s755_s23, 3 }
   0x5   : > { %s866_s24 = smov (%p31_p1, %s29_s24), 0  ;;  %p249_p3 = pnand %p683_p0, %p248_p2 }
   0x6   : > { %p301_p4 = scmp.lt.s32.totalorder (!%p249_p3), %s747_s21, 1  ;;  %v757_v0 = vmov (!%p249_p3), 0   ;;  %vm384_vm0 = vcmask (!%p249_p3), 1043456   ;;  %v731_v9 = vld [vmem:[%s858_s2] sm:$0xff] (!%p249_p3)   ;;  %vm377_vm1 = vcmask (!%p249_p3), 64512   ;;  %v732_v11 = vld [vmem:[%s858_s2 + $0x8] sm:$0xff] (!%p249_p3)  }
   0x7   : > { %252 = sbr.rel (%p249_p3) target bundleno = 473 (0x1d9), region = 40  ;;  %423 = vmatprep.mubr.bf16.mxu0 (!%p249_p3), %v757_v0  ;;  %729 = vset.pattern.permute.xlu0 (!%p249_p3), %v757_v0  ;;  %v452_v48 = vld [vmem:[%s859_s3] sm:$0xf] (!%p249_p3)  ;;  %vm463_vm2 = vcmask (!%p249_p3), 261120   ;;  %vm522_vm3 = vcmask (!%p249_p3), 7168  }
   0x8   : > { %730 = vset.pattern.permute.xlu1 (!%p249_p3), %v757_v0  ;;  %499 = vmatprep.mubr.bf16.mxu1 (!%p249_p3), %v757_v0  ;;  %v457_v49 = vld [vmem:[%s860_s4] sm:$0xff] (!%p249_p3) }
   0xe   : > { %s868_s21 = smov (!%p301_p4, %s747_s21), 1 }
   0xf   : > { %s700_s25 = sshll.u32 %s868_s21, 4  ;;  %s701_s26 = sshll.u32 %s868_s21, 5 }
  0x10   : > { %s308_s29 = scalar_lea.vmem %s856_s0, %s700_s25  ;;  %s314_s8 = scalar_lea.vmem %s857_s1, %s701_s26 }
  0x11   : > { %v336_v1 = vld [vmem:[%s308_s29 + $0x8] sm:$0xff]  ;;  %v335_v2 = vld [vmem:[%s308_s29] sm:$0xff]  ;;  %v345_v6 = vld [vmem:[%s314_s8 + $0x10] sm:$0xff]  ;;  %s333_s19 = scalar_lea.vmem %s862_s6, %s701_s26  ;;  %s323_s28 = scalar_lea.vmem %s861_s5, %s700_s25 }
  0x12   : > { %v343_v3 = vld [vmem:[%s314_s8] sm:$0xff]  ;;  %v338_v4 = vpack.c.bf16 %v336_v1, %v336_v1  ;;  %v337_v5 = vpack.c.bf16 %v335_v2, %v335_v2  ;;  %v344_v7 = vld [vmem:[%s314_s8 + $0x8] sm:$0xff]  ;;  %359 = vperm.xlu1 %730, %v345_v6   ;;  %v346_v10 = vld [vmem:[%s314_s8 + $0x18] sm:$0xff] }
  0x13   : > { %349 = vperm.xlu0 %729, %v343_v3  }
  0x14   : > { %694 = vmatprep.subr.msk.bf16.mxu0 %vm384_vm0, %v338_v4  ;;  %v386_v8 = vsel %vm384_vm0, %v337_v5, 0 }
  0x15   : > { %392 = vmatpush1.bf16.msra.mxu0 %v386_v8 }
  0x16   : > { %364 = vperm.xlu1 %730, %v346_v10  }
  0x17   : > { %354 = vperm.xlu0 %729, %v344_v7  }
  0x18   : > { %695 = vmatmul.mubr.msk.bf16.vlgmr.msra.gmra.mrb[0].mxu0 %vm377_vm1, %v731_v9 }
  0x19   : > { %433 = vmatprep.mubr.bf16.mxu0 %v757_v0 }
  0x20   : > { %696 = vmatmul.mubr.msk.bf16.gmra.mrb[4].mxu0 %vm377_vm1, %v732_v11 }
  0x91   : > { %v360_v23 = vpop.permute.xlu1 %359 }
  0x92   : > { %v350_v12 = vpop.permute.xlu0 %349 }
  0x95   : > { %v365_v34 = vpop.permute.xlu1 %364 }
  0x96   : > { %v355_v14 = vpop.permute.xlu0 %354 }
  0xeb   : > { %v425_v13 = vpop.f32.mrb[0].mxu0 }
  0xec   : > { %v426_v15 = vadd.f32 %v425_v13, %v350_v12  ;;  %v427_v16 = vpop.f32.mrb[1].mxu0 }
  0xed   : > { %v428_v17 = vadd.f32 %v427_v16, %v350_v12  ;;  %v429_v18 = vpop.f32.mrb[2].mxu0 }
  0xee   : > { %v444_v19 = vmax.f32 %v426_v15, 0.0  ;;  %v430_v20 = vadd.f32 %v429_v18, %v355_v14  ;;  %v431_v21 = vpop.f32.mrb[3].mxu0 }
  0xef   : > { %v445_v22 = vmax.f32 %v428_v17, 0.0  ;;  %v432_v24 = vadd.f32 %v431_v21, %v355_v14 }
  0xf0   : > { %v446_v25 = vmax.f32 %v430_v20, 0.0 }
  0xf1   : > { %v447_v26 = vmax.f32 %v432_v24, 0.0  ;;  %v510_v27 = vadd.f32 %v445_v22, %v444_v19 }
  0xf2   : > { %v453_v28 = vpack.c.bf16 %v446_v25, %v444_v19 }
  0xf3   : > { %v435_v29 = vpop.f32.mrb[4].mxu0  ;;  %511 = vadd.xlane.f32.xlu0 %v510_v27  ;;  %v513_v30 = vadd.f32 %v447_v26, %v446_v25  ;;  %v454_v31 = vpack.c.bf16 %v447_v26, %v445_v22 }
  0xf4   : > { %v436_v32 = vadd.f32 %v435_v29, %v360_v23  ;;  %v437_v33 = vpop.f32.mrb[5].mxu0 }
  0xf5   : > { %v438_v35 = vadd.f32 %v437_v33, %v360_v23  ;;  %v439_v36 = vpop.f32.mrb[6].mxu0  ;;  %514 = vadd.xlane.f32.xlu1 %v513_v30  ;;  %467 = vmatprep.subr.bf16.mxu1 %v454_v31 }
  0xf6   : > { %v448_v37 = vmax.f32 %v436_v32, 0.0  ;;  %v440_v38 = vadd.f32 %v439_v36, %v365_v34  ;;  %v441_v39 = vpop.f32.mrb[7].mxu0  ;;  %468 = vmatpush1.bf16.msra.mxu1 %v453_v28 }
  0xf7   : > { %v449_v40 = vmax.f32 %v438_v35, 0.0  ;;  %v442_v41 = vadd.f32 %v441_v39, %v365_v34 }
  0xf8   : > { %v450_v42 = vmax.f32 %v440_v38, 0.0 }
  0xf9   : > { %v451_v43 = vmax.f32 %v442_v41, 0.0  ;;  %v516_v44 = vadd.f32 %v449_v40, %v448_v37 }
  0xfa   : > { %v455_v45 = vpack.c.bf16 %v450_v42, %v448_v37 }
  0xfb   : > { %v456_v46 = vpack.c.bf16 %v451_v43, %v449_v40  ;;  %517 = vadd.xlane.f32.xlu0 %v516_v44  ;;  %v519_v47 = vadd.f32 %v451_v43, %v450_v42 }
  0xfd   : > { %469 = vmatprep.subr.bf16.mxu1 %v456_v46 }
  0xfe   : > { %470 = vmatpush1.bf16.msra.mxu1 %v455_v45 }
  0xff   : > { %520 = vadd.xlane.f32.xlu0 %v519_v47 }
 0x101   : > { %697 = vmatmul.mubr.msk.bf16.vlgmr.msra.gmra.mrb[0].mxu1 %vm463_vm2, %v452_v48 }
 0x106   : > { %460 = vperm.xlu1 %730, %v457_v49  }
 0x180   : > { %v512_v50 = vpop.xlane.xlu0 %511 }
 0x181   : > { %523 = vst.msk [vmem:[%s333_s19] sm:$0xff] %vm522_vm3, %v512_v50 }
 0x182   : > { %v515_v51 = vpop.xlane.xlu1 %514 }
 0x183   : > { %524 = vst.msk [vmem:[%s333_s19 + $0x8] sm:$0xff] %vm522_vm3, %v515_v51 }
 0x186   : > { %v461_v54 = vpop.permute.xlu1 %460 }
 0x188   : > { %v518_v52 = vpop.xlane.xlu0 %517 }
 0x189   : > { %525 = vst.msk [vmem:[%s333_s19 + $0x10] sm:$0xff] %vm522_vm3, %v518_v52 }
 0x18c   : > { %v521_v53 = vpop.xlane.xlu0 %520 }
 0x18d   : > { %526 = vst.msk [vmem:[%s333_s19 + $0x18] sm:$0xff] %vm522_vm3, %v521_v53 }
 0x1d4   : > { %v501_v55 = vpop.f32.mrb[0].mxu1 }
 0x1d5   : > { %v502_v56 = vadd.f32 %v501_v55, %v461_v54  ;;  %v503_v57 = vpop.f32.mrb[1].mxu1 }
 0x1d6   : > { %v504_v58 = vadd.f32 %v503_v57, %v461_v54  ;;  %v505_v59 = vpop.f32.mrb[2].mxu1 }
 0x1d7   : > { %508 = vst [vmem:[%s323_s28] sm:$0xff] %v502_v56  ;;  %v506_v60 = vpop.f32.mrb[3].mxu1 }
 0x1d8   : > { %509 = vst [vmem:[%s323_s28 + $0x8] sm:$0xff] %v504_v58 }
 0x1d9 PF: > { %s17_s23 = sadd.s32 1, %s755_s23   ;;  %s863_s21 = smov %s751_s22 }
 0x1da   : > { %p14_p5 = scmp.ge.s32.totalorder %s17_s23, 4   ;;  %s864_s22 = smov %s866_s24 }
 0x1dc   :  { %16 = sbr.rel (!%p14_p5) target bundleno = 2 (0x2), region = 85 }

</bundles_post_ra>
